<compile_context>
chip_gen: v5e
topology: v5e:2x2
jax: 0.10.0
libtpu: 0.0.40
codegen_flags: <defaults>
</compile_context>

<pallas_src>
import jax
import jax.numpy as jnp
from jax import lax
from jax.experimental import pallas as pl
from jax.experimental.pallas import tpu as pltpu

_LANE = 128


def _round_up(n, m):
    return ((n + m - 1) // m) * m


def _round_down(n, m):
    return max(m, (n // m) * m)


def _discriminator_kernel(x_ref, w1_ref, b1_ref, w2_ref, b2_ref,
                          w3_ref, b3_ref, o_ref):
    # Hidden layer 1: bf16 MXU matmul (the f32 -> bf16 cast of the x tile is
    # folded in here, hidden under the DMA), f32 accumulate; bias +
    # LeakyReLU(0.2) in f32.  Dropout(0.5) == identity in eval mode.
    h = jnp.dot(x_ref[...].astype(jnp.bfloat16), w1_ref[...],
                preferred_element_type=jnp.float32)
    h = h + b1_ref[...]
    h = jnp.where(h > 0, h, 0.2 * h)

    # Hidden layer 2: same pattern.
    h = jnp.dot(h.astype(jnp.bfloat16), w2_ref[...],
                preferred_element_type=jnp.float32)
    h = h + b2_ref[...]
    h = jnp.where(h > 0, h, 0.2 * h)

    # Output Linear(d2, 1), emitted lane-major: contract the feature axis of
    # both operands (NT dimension numbers, same form flash-attention uses for
    # q @ k^T) so the MXU produces the per-row scalars as an (8, tile_r) slab
    # whose row 0 is the result.  No (tile_r, 1) column store and no
    # sublane->lane relayout; the store stays a lane-dense unmasked vst.
    out8 = lax.dot_general(
        w3_ref[...].astype(jnp.bfloat16), h.astype(jnp.bfloat16),
        dimension_numbers=(((1,), (1,)), ((), ())),
        preferred_element_type=jnp.float32)            # (8, tile_r)
    o_ref[...] = out8[0:1, :] + b3_ref[0, 0]


def discriminator_forward(x, params, pac, *, tile_rows=None):
    """x: (B, input_dim) float32, B % pac == 0. Returns (B // pac, 1) f32."""
    B, input_dim = x.shape
    assert B % pac == 0
    pacdim = input_dim * pac
    rows = B // pac
    xp = x.reshape(rows, pacdim)              # matches torch .view (metadata only)

    (w1, b1), (w2, b2), (w3, b3) = params
    d1 = w1.shape[1]
    d2 = w2.shape[1]

    # MXU-width-aware padding for the hidden dims: 256 granularity on
    # 256-wide-MXU chips (v6e/v7x) when the real dim is >=128, else 128
    # (v5e's 128-wide MXU, or genuinely small dims).  pacdim stays at 128
    # granularity: widening it would force a padded copy of x (an extra HBM
    # pass) and this kernel is input-bandwidth bound.
    try:
        kind = jax.devices()[0].device_kind.lower()
        wide_mxu = not any(v in kind for v in ("v2", "v3", "v4", "v5"))
    except Exception:
        wide_mxu = False

    def _hidden_pad(d):
        return _round_up(d, 256 if (wide_mxu and d >= 128) else _LANE)

    d1_p = _hidden_pad(d1)
    d2_p = _hidden_pad(d2)

    aligned = (pacdim % _LANE == 0)
    pacdim_p = pacdim if aligned else _round_up(pacdim, _LANE)
    x_item = xp.dtype.itemsize if aligned else 2      # padded copy (rare) is bf16

    # Generation-aware VMEM budget (v7x: 64 MiB physical per TC; v5e/v6e: 128).
    vmem_cap = 64 * 1024 * 1024
    try:
        vmem_cap = int(pltpu.get_tpu_info().vmem_capacity_bytes)
    except Exception:
        pass
    budget = max(24 * 1024 * 1024,
                 min(int(vmem_cap * 0.70), vmem_cap - 16 * 1024 * 1024))

    # Row tile: MiB-scale (amortizes ~0.35 us / ~600 cycles per grid step),
    # multiple of 128 so the (1, tile_r) output block stays lane-dense,
    # clamped to the problem size and shrunk if the VMEM estimate won't fit.
    if tile_rows is None:
        tile_rows = min(8192,
                        _round_down(2 * 1024 * 1024 // (pacdim_p * x_item), _LANE))
    tile_r = max(_LANE, min(_round_up(tile_rows, _LANE), _round_up(rows, _LANE)))

    def _vmem_estimate(tr):
        x_tile = tr * pacdim_p * x_item                 # input tile
        out_tile = 8 * tr * 4                           # (1, tr) block, 8-sublane pad
        weights = ((pacdim_p * d1_p + d1_p * d2_p) * 2
                   + (d1_p + d2_p + 8 * d2_p) * 4)
        live = tr * (pacdim_p * 2 + (d1_p + d2_p) * 4)  # bf16 x + f32 h1/h2
        return 2 * (x_tile + out_tile) + 2 * weights + live

    while tile_r > _LANE and _vmem_estimate(tile_r) > budget:
        tile_r = max(_LANE, _round_down(tile_r // 2, _LANE))

    n_tiles = pl.cdiv(rows, tile_r)
    cols_out = n_tiles * tile_r
    vmem_limit = int(min(max(_vmem_estimate(tile_r) + 8 * 1024 * 1024,
                             32 * 1024 * 1024),
                         int(vmem_cap * 0.75)))

    def _pad(a, shape, dtype):
        a = a.astype(dtype)
        if a.shape == tuple(shape):
            return a
        out = jnp.zeros(shape, dtype)
        return out.at[tuple(slice(0, s) for s in a.shape)].set(a)

    # x: no wrapper copy/cast in the lane-aligned case.  Rows are never padded;
    # the ragged tail (if any) is a Pallas partial block whose garbage rows
    # only produce outputs that are sliced off (rows are independent).
    if aligned:
        x_in = xp
    else:
        x_in = _pad(xp, (rows, pacdim_p), jnp.bfloat16)

    # Zero padding keeps padded lanes at exactly 0 through bias + LeakyReLU,
    # so nothing leaks into later layers.
    w1_p = _pad(w1, (pacdim_p, d1_p), jnp.bfloat16)
    b1_p = _pad(b1.reshape(1, -1), (1, d1_p), jnp.float32)
    w2_p = _pad(w2, (d1_p, d2_p), jnp.bfloat16)
    b2_p = _pad(b2.reshape(1, -1), (1, d2_p), jnp.float32)
    w3_p = _pad(w3[:, 0].reshape(1, -1), (8, d2_p), jnp.float32)   # row 0 = w3
    b3_s = b3.reshape(1, 1).astype(jnp.float32)

    flops = 2 * cols_out * (pacdim_p * d1_p + d1_p * d2_p + 8 * d2_p)
    bytes_accessed = (rows * pacdim_p * x_item + cols_out * 4
                      + (pacdim_p * d1_p + d1_p * d2_p) * 2
                      + (d1_p + d2_p + 8 * d2_p + 1) * 4)

    def _build(single_buffer_weights):
        def w_spec(shape):
            if single_buffer_weights:
                # Constant index_map, never re-fetched: one buffer is enough.
                return pl.BlockSpec(shape, lambda i: (0, 0),
                                    pipeline_mode=pl.Buffered(1))
            return pl.BlockSpec(shape, lambda i: (0, 0))

        return pl.pallas_call(
            _discriminator_kernel,
            out_shape=jax.ShapeDtypeStruct((1, cols_out), jnp.float32),
            grid=(n_tiles,),
            in_specs=[
                pl.BlockSpec((tile_r, pacdim_p), lambda i: (i, 0)),   # x tile
                w_spec((pacdim_p, d1_p)),                             # w1 (resident)
                pl.BlockSpec((1, d1_p), lambda i: (0, 0)),            # b1
                w_spec((d1_p, d2_p)),                                 # w2 (resident)
                pl.BlockSpec((1, d2_p), lambda i: (0, 0)),            # b2
                pl.BlockSpec((8, d2_p), lambda i: (0, 0)),            # w3 (row 0)
                pl.BlockSpec(memory_space=pltpu.MemorySpace.SMEM),    # b3 scalar
            ],
            out_specs=pl.BlockSpec((1, tile_r), lambda i: (0, i)),
            compiler_params=pltpu.CompilerParams(
                dimension_semantics=("parallel",),
                vmem_limit_bytes=vmem_limit),
            cost_estimate=pl.CostEstimate(flops=int(flops), transcendentals=0,
                                          bytes_accessed=int(bytes_accessed)),
        )

    args = (x_in, w1_p, b1_p, w2_p, b2_p, w3_p, b3_s)
    try:
        out_full = _build(True)(*args)    # single-buffered resident weights
    except Exception:
        out_full = _build(False)(*args)   # fallback: default double buffering

    return out_full[0, :rows].reshape(rows, 1)


def init_params(key, input_dim, discriminator_dim, pac):
    """Deterministic param init mirroring torch Linear shapes.

    torch stores weight (out, in); we keep the transposed (in, out) layout so
    the kernel computes x @ W + b directly.
    """
    assert len(discriminator_dim) == 2, "kernel is specialized to 2 hidden layers"
    dims = [input_dim * pac] + list(discriminator_dim) + [1]
    params = []
    for i in range(len(dims) - 1):
        key, kw, kb = jax.random.split(key, 3)
        fan_in = dims[i]
        bound = 1.0 / jnp.sqrt(fan_in)
        w = jax.random.uniform(kw, (dims[i], dims[i + 1]),
                               minval=-bound, maxval=bound, dtype=jnp.float32)
        b = jax.random.uniform(kb, (dims[i + 1],),
                               minval=-bound, maxval=bound, dtype=jnp.float32)
        params.append((w, b))
    return params


def reference_forward(x, params, pac):
    """Pure-JAX reference with the same bf16-operand / f32-accum numerics."""
    B, input_dim = x.shape
    h = x.reshape(B // pac, input_dim * pac)
    (w1, b1), (w2, b2), (w3, b3) = params
    h = jnp.dot(h.astype(jnp.bfloat16), w1.astype(jnp.bfloat16),
                preferred_element_type=jnp.float32) + b1
    h = jnp.where(h > 0, h, 0.2 * h)
    h = jnp.dot(h.astype(jnp.bfloat16), w2.astype(jnp.bfloat16),
                preferred_element_type=jnp.float32) + b2
    h = jnp.where(h > 0, h, 0.2 * h)
    return jnp.dot(h.astype(jnp.bfloat16), w3.astype(jnp.bfloat16),
                   preferred_element_type=jnp.float32) + b3


if __name__ == "__main__":
    key = jax.random.PRNGKey(0)

    # Small shapes consistent with the module: pac=8, input_dim=16 -> pacdim=128
    pac = 8
    input_dim = 16
    discriminator_dim = (32, 32)
    batch = 16                      # divisible by pac -> 2 packed rows

    key, kx, kp = jax.random.split(key, 3)
    x = jax.random.normal(kx, (batch, input_dim), dtype=jnp.float32)
    params = init_params(kp, input_dim, discriminator_dim, pac)

    out = discriminator_forward(x, params, pac)
    out = jax.block_until_ready(out)

    ref = reference_forward(x, params, pac)
    assert out.shape == (batch // pac, 1)
    assert jnp.allclose(out, ref, atol=1e-3, rtol=1e-3), (out, ref)

    print("KERNEL_OK")
</pallas_src>

<mosaic_0001>
module attributes {stable_mosaic.version = 11 : i64} {
  func.func @_discriminator_kernel(%arg0: i32, %arg1: memref<128x128xf32, #tpu.memory_space<vmem>>, %arg2: memref<128x128xbf16, #tpu.memory_space<vmem>>, %arg3: memref<1x128xf32, #tpu.memory_space<vmem>>, %arg4: memref<128x128xbf16, #tpu.memory_space<vmem>>, %arg5: memref<1x128xf32, #tpu.memory_space<vmem>>, %arg6: memref<8x128xf32, #tpu.memory_space<vmem>>, %arg7: memref<1x1xf32, #tpu.memory_space<smem>>, %arg8: memref<1x128xf32, #tpu.memory_space<vmem>>) attributes {dimension_semantics = [#tpu.dimension_semantics<parallel>], iteration_bounds = array<i64: 1>, scalar_prefetch = 0 : i64, scratch_operands = 0 : i64, tpu.core_type = #tpu.core_type<tc>, window_params = [{transform_indices = @transform_0, window_bounds = array<i64: 128, 128>}, {pipeline_mode = #tpu.pipeline_mode<synchronous>, transform_indices = @transform_1, window_bounds = array<i64: 128, 128>}, {pipeline_mode = #tpu.pipeline_mode<synchronous>, transform_indices = @transform_2, window_bounds = array<i64: 1, 128>}, {pipeline_mode = #tpu.pipeline_mode<synchronous>, transform_indices = @transform_3, window_bounds = array<i64: 128, 128>}, {pipeline_mode = #tpu.pipeline_mode<synchronous>, transform_indices = @transform_4, window_bounds = array<i64: 1, 128>}, {pipeline_mode = #tpu.pipeline_mode<synchronous>, transform_indices = @transform_5, window_bounds = array<i64: 8, 128>}, {transform_indices = @transform_6, window_bounds = array<i64: 1, 1>}, {transform_indices = @transform_7, window_bounds = array<i64: 1, 128>}]} {
    %c0 = arith.constant 0 : index
    %c0_0 = arith.constant 0 : index
    %0 = vector.load %arg1[%c0, %c0_0] : memref<128x128xf32, #tpu.memory_space<vmem>>, vector<128x128xf32>
    %1 = arith.truncf %0 : vector<128x128xf32> to vector<128x128xbf16>
    %c0_1 = arith.constant 0 : index
    %c0_2 = arith.constant 0 : index
    %2 = vector.load %arg2[%c0_1, %c0_2] : memref<128x128xbf16, #tpu.memory_space<vmem>>, vector<128x128xbf16>
    %cst = arith.constant dense<0.000000e+00> : vector<128x128xf32>
    %3 = tpu.matmul %1, %2, %cst {dimension_numbers = #tpu.dot_dimension_numbers<[1], [0], [0], [1], [0, 0, 1, 1], [], []>} : vector<128x128xbf16>, vector<128x128xbf16>, vector<128x128xf32> -> vector<128x128xf32>
    %c0_3 = arith.constant 0 : index
    %c0_4 = arith.constant 0 : index
    %4 = vector.load %arg3[%c0_3, %c0_4] : memref<1x128xf32, #tpu.memory_space<vmem>>, vector<1x128xf32>
    %5 = vector.broadcast %4 : vector<1x128xf32> to vector<128x128xf32>
    %6 = arith.addf %3, %5 : vector<128x128xf32>
    %cst_5 = arith.constant 0.000000e+00 : f32
    %7 = vector.broadcast %cst_5 : f32 to vector<128x128xf32>
    %8 = arith.cmpf ogt, %6, %7 : vector<128x128xf32>
    %cst_6 = arith.constant 2.000000e-01 : f32
    %9 = vector.broadcast %cst_6 : f32 to vector<128x128xf32>
    %10 = arith.mulf %9, %6 : vector<128x128xf32>
    %11 = arith.select %8, %6, %10 : vector<128x128xi1>, vector<128x128xf32>
    %12 = arith.truncf %11 : vector<128x128xf32> to vector<128x128xbf16>
    %c0_7 = arith.constant 0 : index
    %c0_8 = arith.constant 0 : index
    %13 = vector.load %arg4[%c0_7, %c0_8] : memref<128x128xbf16, #tpu.memory_space<vmem>>, vector<128x128xbf16>
    %cst_9 = arith.constant dense<0.000000e+00> : vector<128x128xf32>
    %14 = tpu.matmul %12, %13, %cst_9 {dimension_numbers = #tpu.dot_dimension_numbers<[1], [0], [0], [1], [0, 0, 1, 1], [], []>} : vector<128x128xbf16>, vector<128x128xbf16>, vector<128x128xf32> -> vector<128x128xf32>
    %c0_10 = arith.constant 0 : index
    %c0_11 = arith.constant 0 : index
    %15 = vector.load %arg5[%c0_10, %c0_11] : memref<1x128xf32, #tpu.memory_space<vmem>>, vector<1x128xf32>
    %16 = vector.broadcast %15 : vector<1x128xf32> to vector<128x128xf32>
    %17 = arith.addf %14, %16 : vector<128x128xf32>
    %cst_12 = arith.constant 0.000000e+00 : f32
    %18 = vector.broadcast %cst_12 : f32 to vector<128x128xf32>
    %19 = arith.cmpf ogt, %17, %18 : vector<128x128xf32>
    %cst_13 = arith.constant 2.000000e-01 : f32
    %20 = vector.broadcast %cst_13 : f32 to vector<128x128xf32>
    %21 = arith.mulf %20, %17 : vector<128x128xf32>
    %22 = arith.select %19, %17, %21 : vector<128x128xi1>, vector<128x128xf32>
    %c0_14 = arith.constant 0 : index
    %c0_15 = arith.constant 0 : index
    %23 = vector.load %arg6[%c0_14, %c0_15] : memref<8x128xf32, #tpu.memory_space<vmem>>, vector<8x128xf32>
    %24 = arith.truncf %23 : vector<8x128xf32> to vector<8x128xbf16>
    %25 = arith.truncf %22 : vector<128x128xf32> to vector<128x128xbf16>
    %cst_16 = arith.constant dense<0.000000e+00> : vector<8x128xf32>
    %26 = tpu.matmul %24, %25, %cst_16 {dimension_numbers = #tpu.dot_dimension_numbers<[1], [1], [0], [0], [0, 0, 1, 0], [], []>} : vector<8x128xbf16>, vector<128x128xbf16>, vector<8x128xf32> -> vector<8x128xf32>
    %27 = vector.extract_strided_slice %26 {offsets = [0, 0], sizes = [1, 128], strides = [1, 1]} : vector<8x128xf32> to vector<1x128xf32>
    %c0_17 = arith.constant 0 : index
    %c0_18 = arith.constant 0 : index
    %28 = memref.load %arg7[%c0_17, %c0_18] : memref<1x1xf32, #tpu.memory_space<smem>>
    %29 = vector.broadcast %28 : f32 to vector<1x128xf32>
    %30 = arith.addf %27, %29 : vector<1x128xf32>
    %c0_19 = arith.constant 0 : index
    %c0_20 = arith.constant 0 : index
    %31 = vector.load %arg8[%c0_19, %c0_20] : memref<1x128xf32, #tpu.memory_space<vmem>>, vector<1x128xf32>
    tpu.vector_store %arg8[%c0_19, %c0_20], %30 {strides = array<i32>} : memref<1x128xf32, #tpu.memory_space<vmem>>, vector<1x128xf32>,
    return
  }
  func.func @transform_0(%arg0: i32) -> (i32, i32) {
    %c0_i32 = arith.constant 0 : i32
    %c0_i32_0 = arith.constant 0 : i32
    return %arg0, %c0_i32 : i32, i32
  }
  func.func @transform_1(%arg0: i32) -> (i32, i32) {
    %c0_i32 = arith.constant 0 : i32
    %c0_i32_0 = arith.constant 0 : i32
    %c0_i32_1 = arith.constant 0 : i32
    return %c0_i32, %c0_i32_0 : i32, i32
  }
  func.func @transform_2(%arg0: i32) -> (i32, i32) {
    %c0_i32 = arith.constant 0 : i32
    %c0_i32_0 = arith.constant 0 : i32
    %c0_i32_1 = arith.constant 0 : i32
    return %c0_i32, %c0_i32_0 : i32, i32
  }
  func.func @transform_3(%arg0: i32) -> (i32, i32) {
    %c0_i32 = arith.constant 0 : i32
    %c0_i32_0 = arith.constant 0 : i32
    %c0_i32_1 = arith.constant 0 : i32
    return %c0_i32, %c0_i32_0 : i32, i32
  }
  func.func @transform_4(%arg0: i32) -> (i32, i32) {
    %c0_i32 = arith.constant 0 : i32
    %c0_i32_0 = arith.constant 0 : i32
    %c0_i32_1 = arith.constant 0 : i32
    return %c0_i32, %c0_i32_0 : i32, i32
  }
  func.func @transform_5(%arg0: i32) -> (i32, i32) {
    %c0_i32 = arith.constant 0 : i32
    %c0_i32_0 = arith.constant 0 : i32
    %c0_i32_1 = arith.constant 0 : i32
    return %c0_i32, %c0_i32_0 : i32, i32
  }
  func.func @transform_6(%arg0: i32) -> (i32, i32) {
    %c0_i32 = arith.constant 0 : i32
    %c0_i32_0 = arith.constant 0 : i32
    %c0_i32_1 = arith.constant 0 : i32
    return %c0_i32, %c0_i32_0 : i32, i32
  }
  func.func @transform_7(%arg0: i32) -> (i32, i32) {
    %c0_i32 = arith.constant 0 : i32
    %c0_i32_0 = arith.constant 0 : i32
    return %c0_i32, %arg0 : i32, i32
  }
}

module attributes {stable_mosaic.version = 11 : i64} {
  func.func @_discriminator_kernel(%arg0: i32, %arg1: memref<128x128xf32, #tpu.memory_space<vmem>>, %arg2: memref<128x128xbf16, #tpu.memory_space<vmem>>, %arg3: memref<1x128xf32, #tpu.memory_space<vmem>>, %arg4: memref<128x128xbf16, #tpu.memory_space<vmem>>, %arg5: memref<1x128xf32, #tpu.memory_space<vmem>>, %arg6: memref<8x128xf32, #tpu.memory_space<vmem>>, %arg7: memref<1x1xf32, #tpu.memory_space<smem>>, %arg8: memref<1x128xf32, #tpu.memory_space<vmem>>) attributes {dimension_semantics = [#tpu.dimension_semantics<parallel>], iteration_bounds = array<i64: 1>, scalar_prefetch = 0 : i64, scratch_operands = 0 : i64, tpu.core_type = #tpu.core_type<tc>, window_params = [{transform_indices = @transform_0, window_bounds = array<i64: 128, 128>}, {pipeline_mode = #tpu.pipeline_mode<synchronous>, transform_indices = @transform_1, window_bounds = array<i64: 128, 128>}, {pipeline_mode = #tpu.pipeline_mode<synchronous>, transform_indices = @transform_2, window_bounds = array<i64: 1, 128>}, {pipeline_mode = #tpu.pipeline_mode<synchronous>, transform_indices = @transform_3, window_bounds = array<i64: 128, 128>}, {pipeline_mode = #tpu.pipeline_mode<synchronous>, transform_indices = @transform_4, window_bounds = array<i64: 1, 128>}, {pipeline_mode = #tpu.pipeline_mode<synchronous>, transform_indices = @transform_5, window_bounds = array<i64: 8, 128>}, {transform_indices = @transform_6, window_bounds = array<i64: 1, 1>}, {transform_indices = @transform_7, window_bounds = array<i64: 1, 128>}]} {
    %c0 = arith.constant 0 : index
    %c0_0 = arith.constant 0 : index
    %0 = vector.load %arg1[%c0, %c0_0] : memref<128x128xf32, #tpu.memory_space<vmem>>, vector<128x128xf32>
    %1 = arith.truncf %0 : vector<128x128xf32> to vector<128x128xbf16>
    %c0_1 = arith.constant 0 : index
    %c0_2 = arith.constant 0 : index
    %2 = vector.load %arg2[%c0_1, %c0_2] : memref<128x128xbf16, #tpu.memory_space<vmem>>, vector<128x128xbf16>
    %cst = arith.constant dense<0.000000e+00> : vector<128x128xf32>
    %3 = tpu.matmul %1, %2, %cst {dimension_numbers = #tpu.dot_dimension_numbers<[1], [0], [0], [1], [0, 0, 1, 1], [], []>} : vector<128x128xbf16>, vector<128x128xbf16>, vector<128x128xf32> -> vector<128x128xf32>
    %c0_3 = arith.constant 0 : index
    %c0_4 = arith.constant 0 : index
    %4 = vector.load %arg3[%c0_3, %c0_4] : memref<1x128xf32, #tpu.memory_space<vmem>>, vector<1x128xf32>
    %5 = vector.broadcast %4 : vector<1x128xf32> to vector<128x128xf32>
    %6 = arith.addf %3, %5 : vector<128x128xf32>
    %cst_5 = arith.constant 0.000000e+00 : f32
    %7 = vector.broadcast %cst_5 : f32 to vector<128x128xf32>
    %8 = arith.cmpf ogt, %6, %7 : vector<128x128xf32>
    %cst_6 = arith.constant 2.000000e-01 : f32
    %9 = vector.broadcast %cst_6 : f32 to vector<128x128xf32>
    %10 = arith.mulf %9, %6 : vector<128x128xf32>
    %11 = arith.select %8, %6, %10 : vector<128x128xi1>, vector<128x128xf32>
    %12 = arith.truncf %11 : vector<128x128xf32> to vector<128x128xbf16>
    %c0_7 = arith.constant 0 : index
    %c0_8 = arith.constant 0 : index
    %13 = vector.load %arg4[%c0_7, %c0_8] : memref<128x128xbf16, #tpu.memory_space<vmem>>, vector<128x128xbf16>
    %cst_9 = arith.constant dense<0.000000e+00> : vector<128x128xf32>
    %14 = tpu.matmul %12, %13, %cst_9 {dimension_numbers = #tpu.dot_dimension_numbers<[1], [0], [0], [1], [0, 0, 1, 1], [], []>} : vector<128x128xbf16>, vector<128x128xbf16>, vector<128x128xf32> -> vector<128x128xf32>
    %c0_10 = arith.constant 0 : index
    %c0_11 = arith.constant 0 : index
    %15 = vector.load %arg5[%c0_10, %c0_11] : memref<1x128xf32, #tpu.memory_space<vmem>>, vector<1x128xf32>
    %16 = vector.broadcast %15 : vector<1x128xf32> to vector<128x128xf32>
    %17 = arith.addf %14, %16 : vector<128x128xf32>
    %cst_12 = arith.constant 0.000000e+00 : f32
    %18 = vector.broadcast %cst_12 : f32 to vector<128x128xf32>
    %19 = arith.cmpf ogt, %17, %18 : vector<128x128xf32>
    %cst_13 = arith.constant 2.000000e-01 : f32
    %20 = vector.broadcast %cst_13 : f32 to vector<128x128xf32>
    %21 = arith.mulf %20, %17 : vector<128x128xf32>
    %22 = arith.select %19, %17, %21 : vector<128x128xi1>, vector<128x128xf32>
    %c0_14 = arith.constant 0 : index
    %c0_15 = arith.constant 0 : index
    %23 = vector.load %arg6[%c0_14, %c0_15] : memref<8x128xf32, #tpu.memory_space<vmem>>, vector<8x128xf32>
    %24 = arith.truncf %23 : vector<8x128xf32> to vector<8x128xbf16>
    %25 = arith.truncf %22 : vector<128x128xf32> to vector<128x128xbf16>
    %cst_16 = arith.constant dense<0.000000e+00> : vector<8x128xf32>
    %26 = tpu.matmul %24, %25, %cst_16 {dimension_numbers = #tpu.dot_dimension_numbers<[1], [1], [0], [0], [0, 0, 1, 0], [], []>} : vector<8x128xbf16>, vector<128x128xbf16>, vector<8x128xf32> -> vector<8x128xf32>
    %27 = vector.extract_strided_slice %26 {offsets = [0, 0], sizes = [1, 128], strides = [1, 1]} : vector<8x128xf32> to vector<1x128xf32>
    %c0_17 = arith.constant 0 : index
    %c0_18 = arith.constant 0 : index
    %28 = memref.load %arg7[%c0_17, %c0_18] : memref<1x1xf32, #tpu.memory_space<smem>>
    %29 = vector.broadcast %28 : f32 to vector<1x128xf32>
    %30 = arith.addf %27, %29 : vector<1x128xf32>
    %c0_19 = arith.constant 0 : index
    %c0_20 = arith.constant 0 : index
    %31 = vector.load %arg8[%c0_19, %c0_20] : memref<1x128xf32, #tpu.memory_space<vmem>>, vector<1x128xf32>
    tpu.vector_store %arg8[%c0_19, %c0_20], %30 {strides = array<i32>} : memref<1x128xf32, #tpu.memory_space<vmem>>, vector<1x128xf32>,
    return
  }
  func.func @transform_0(%arg0: i32) -> (i32, i32) {
    %c0_i32 = arith.constant 0 : i32
    %c0_i32_0 = arith.constant 0 : i32
    return %arg0, %c0_i32 : i32, i32
  }
  func.func @transform_1(%arg0: i32) -> (i32, i32) {
    %c0_i32 = arith.constant 0 : i32
    %c0_i32_0 = arith.constant 0 : i32
    %c0_i32_1 = arith.constant 0 : i32
    return %c0_i32, %c0_i32_0 : i32, i32
  }
  func.func @transform_2(%arg0: i32) -> (i32, i32) {
    %c0_i32 = arith.constant 0 : i32
    %c0_i32_0 = arith.constant 0 : i32
    %c0_i32_1 = arith.constant 0 : i32
    return %c0_i32, %c0_i32_0 : i32, i32
  }
  func.func @transform_3(%arg0: i32) -> (i32, i32) {
    %c0_i32 = arith.constant 0 : i32
    %c0_i32_0 = arith.constant 0 : i32
    %c0_i32_1 = arith.constant 0 : i32
    return %c0_i32, %c0_i32_0 : i32, i32
  }
  func.func @transform_4(%arg0: i32) -> (i32, i32) {
    %c0_i32 = arith.constant 0 : i32
    %c0_i32_0 = arith.constant 0 : i32
    %c0_i32_1 = arith.constant 0 : i32
    return %c0_i32, %c0_i32_0 : i32, i32
  }
  func.func @transform_5(%arg0: i32) -> (i32, i32) {
    %c0_i32 = arith.constant 0 : i32
    %c0_i32_0 = arith.constant 0 : i32
    %c0_i32_1 = arith.constant 0 : i32
    return %c0_i32, %c0_i32_0 : i32, i32
  }
  func.func @transform_6(%arg0: i32) -> (i32, i32) {
    %c0_i32 = arith.constant 0 : i32
    %c0_i32_0 = arith.constant 0 : i32
    %c0_i32_1 = arith.constant 0 : i32
    return %c0_i32, %c0_i32_0 : i32, i32
  }
  func.func @transform_7(%arg0: i32) -> (i32, i32) {
    %c0_i32 = arith.constant 0 : i32
    %c0_i32_0 = arith.constant 0 : i32
    return %c0_i32, %arg0 : i32, i32
  }
}

</mosaic_0001>

<bundles_post_ra>
// kernel: tpu_custom_call.1
= control target key start
LH: loop header
LB: loop body
LE: loop exit
PB: predicated region body
PF: predicated region fallthrough
CT: control target
= control target key end

     0   :  { %13 = vsyncpa [#allocation4], 0  ;;  %s850_s0 = inlined_call_operand.vmem [shape: f32[2,128], index: 0, kind: input, shape index: {}]   ;;  %s851_s1 = inlined_call_operand.hbm [shape: bf16[128,128], index: 1, kind: input, shape index: {}]   ;;  %s852_s2 = inlined_call_operand.vmem [shape: f32[1,128], index: 2, kind: input, shape index: {}]   ;;  %s853_s3 = inlined_call_operand.hbm [shape: bf16[128,128], index: 3, kind: input, shape index: {}]   ;;  %s854_s4 = inlined_call_operand.vmem [shape: f32[1,128], index: 4, kind: input, shape index: {}]   ;;  %s855_s5 = inlined_call_operand.hbm [shape: f32[8,128], index: 5, kind: input, shape index: {}]   ;;  %s856_s6 = inlined_call_operand.<no memory space> [shape: f32[1,1], index: 6, kind: input, shape index: {}]   ;;  %s857_s7 = inlined_call_operand.hbm [shape: f32[1,128], index: 7, kind: output, shape index: {}]  }
   0x1   :  { %14 = vsyncpa [#allocation7], 0 }
   0x2   :  { %15 = vsyncpa [#allocation5], 0  ;;  %s37_s26 = sshll.u32 %s853_s3, 4  ;;  %s678_s27 = smov [#allocation6]   ;;  %s38_s26 = int_to_ptr.hbm [resolvable:$true] %s37_s26 }
   0x3   :  { %s39_s28 = sshll.u32 %s678_s27, 4  ;;  %s22_s8 = sshll.u32 %s851_s1, 4  ;;  %s40_s28 = int_to_ptr.vmem [resolvable:$true] %s39_s28  ;;  %s23_s8 = int_to_ptr.hbm [resolvable:$true] %s22_s8 }
   0x4   :  { %s679_s9 = smov 64   ;;  %s680_s10 = smov 4  }
   0x5   :  { %45 = dma.hbm_to_vmem [thread:$0]  %s38_s26, 1024, %s40_s28, [#allocation7], %s679_s9, %s679_s9, %s680_s10  }
   0x6   :  { %s681_s11 = smov [#allocation3]   ;;  %s53_s15 = sshll.u32 %s855_s5, 4  ;;  %s54_s15 = int_to_ptr.hbm [resolvable:$true] %s53_s15 }
   0x7   :  { %s24_s12 = sshll.u32 %s681_s11, 4  ;;  %s682_s3 = smov [#allocation8]   ;;  %s25_s12 = int_to_ptr.vmem [resolvable:$true] %s24_s12 }
   0x8   :  { %30 = dma.hbm_to_vmem [thread:$0]  %s23_s8, 1024, %s25_s12, [#allocation4], %s679_s9, %s679_s9, %s680_s10  }
   0x9   :  { %s55_s16 = sshll.u32 %s682_s3, 4  ;;  %s56_s16 = int_to_ptr.vmem [resolvable:$true] %s55_s16 }
   0xa   :  { %58 = dma.hbm_to_vmem [thread:$0]  %s54_s15, 128, %s56_s16, [#allocation7]  }
   0xb   :  { %672 = dma.done.wait [#allocation4], 1024  }
   0xc   :  { %673 = vsyncadd [#allocation4], 4294966272 }
   0xd   :  { %674 = dma.done.wait [#allocation7], 1152  }
   0xe   :  { %675 = vsyncadd [#allocation7], 4294966144  ;;  %v551_v0 = vld [vmem:[#allocation3 + $0x38] sm:$0xff]  ;;  %v550_v1 = vld [vmem:[#allocation3 + $0x30] sm:$0xff]  ;;  %s683_s24 = smov [#allocation9]   ;;  %s469_s28 = sshll.u32 %s857_s7, 4  ;;  %s470_s28 = int_to_ptr.hbm [resolvable:$true] %s469_s28 }
   0xf   :  { %165 = vmatpush.bf16.msra.mxu0 %v551_v0  ;;  %560 = vmatpush.bf16.msra.mxu3 %v551_v0  ;;  %v549_v2 = vld [vmem:[#allocation3 + $0x28] sm:$0xff]  ;;  %v548_v3 = vld [vmem:[#allocation3 + $0x20] sm:$0xff]  ;;  %v547_v4 = vld [vmem:[#allocation3 + $0x18] sm:$0xff]  ;;  %s467_s25 = sshll.u32 %s683_s24, 4  ;;  %s468_s25 = int_to_ptr.vmem [resolvable:$true] %s467_s25 }
  0x10   :  { %v546_v5 = vld [vmem:[#allocation3 + $0x10] sm:$0xff]  ;;  %v545_v6 = vld [vmem:[#allocation3 + $0x8] sm:$0xff]  ;;  %v544_v7 = vld [vmem:[#allocation3] sm:$0xff] }
  0x11   :  { %v73_v8 = vld [vmem:[%s850_s0] sm:$0xff]  ;;  %v74_v9 = vld [vmem:[%s850_s0 + $0x8] sm:$0xff]  ;;  %v75_v11 = vld [vmem:[%s850_s0 + $0x10] sm:$0xff] }
  0x12   :  { %v89_v10 = vpack.c.bf16 %v74_v9, %v73_v8  ;;  %v76_v12 = vld [vmem:[%s850_s0 + $0x18] sm:$0xff]  ;;  %v77_v14 = vld [vmem:[%s850_s0 + $0x20] sm:$0xff]  ;;  %v78_v15 = vld [vmem:[%s850_s0 + $0x28] sm:$0xff] }
  0x13   :  { %166 = vmatpush.bf16.msra.mxu0 %v550_v1  ;;  %561 = vmatpush.bf16.msra.mxu3 %v550_v1  ;;  %v90_v13 = vpack.c.bf16 %v76_v12, %v75_v11  ;;  %v91_v16 = vpack.c.bf16 %v78_v15, %v77_v14  ;;  %v83_v17 = vld [vmem:[%s850_s0 + $0x50] sm:$0xff]  ;;  %v84_v18 = vld [vmem:[%s850_s0 + $0x58] sm:$0xff]  ;;  %v557_v22 = vld [vmem:[#allocation6 + $0x28] sm:$0xff] }
  0x14   :  { %v94_v19 = vpack.c.bf16 %v84_v18, %v83_v17  ;;  %v559_v20 = vld [vmem:[#allocation6 + $0x38] sm:$0xff]  ;;  %v558_v21 = vld [vmem:[#allocation6 + $0x30] sm:$0xff]  ;;  %v85_v25 = vld [vmem:[%s850_s0 + $0x60] sm:$0xff] }
  0x15   :  { %338 = vmatpush.bf16.msra.mxu1 %v559_v20  ;;  %v79_v23 = vld [vmem:[%s850_s0 + $0x30] sm:$0xff]  ;;  %v80_v24 = vld [vmem:[%s850_s0 + $0x38] sm:$0xff]  ;;  %v86_v26 = vld [vmem:[%s850_s0 + $0x68] sm:$0xff] }
  0x16   :  { %v556_v27 = vld [vmem:[#allocation6 + $0x20] sm:$0xff]  ;;  %v92_v28 = vpack.c.bf16 %v80_v24, %v79_v23  ;;  %v95_v29 = vpack.c.bf16 %v86_v26, %v85_v25  ;;  %v82_v31 = vld [vmem:[%s850_s0 + $0x48] sm:$0xff]  ;;  %v87_v32 = vld [vmem:[%s850_s0 + $0x70] sm:$0xff] }
  0x17   :  { %167 = vmatpush.bf16.msra.mxu0 %v549_v2  ;;  %562 = vmatpush.bf16.msra.mxu3 %v549_v2  ;;  %v81_v30 = vld [vmem:[%s850_s0 + $0x40] sm:$0xff]  ;;  %v88_v33 = vld [vmem:[%s850_s0 + $0x78] sm:$0xff]  ;;  %v554_v37 = vld [vmem:[#allocation6 + $0x10] sm:$0xff] }
  0x18   :  { %v93_v34 = vpack.c.bf16 %v82_v31, %v81_v30  ;;  %v96_v35 = vpack.c.bf16 %v88_v33, %v87_v32  ;;  %v555_v36 = vld [vmem:[#allocation6 + $0x18] sm:$0xff]  ;;  %v553_v38 = vld [vmem:[#allocation6 + $0x8] sm:$0xff]  ;;  %v552_v39 = vld [vmem:[#allocation6] sm:$0xff] }
  0x19   :  { %339 = vmatpush.bf16.msra.mxu1 %v558_v21  ;;  %v784_v41 = vld [vmem:[%s852_s2] ss:$0 sm:$0xff] }
  0x1b   :  { %168 = vmatpush.bf16.msra.mxu0 %v548_v3  ;;  %563 = vmatpush.bf16.msra.mxu3 %v548_v3 }
  0x1d   :  { %340 = vmatpush.bf16.msra.mxu1 %v557_v22 }
  0x1f   :  { %169 = vmatpush.bf16.msra.mxu0 %v547_v4  ;;  %564 = vmatpush.bf16.msra.mxu3 %v547_v4 }
  0x21   :  { %341 = vmatpush.bf16.msra.mxu1 %v556_v27 }
  0x23   :  { %170 = vmatpush.bf16.msra.mxu0 %v546_v5  ;;  %565 = vmatpush.bf16.msra.mxu3 %v546_v5 }
  0x25   :  { %342 = vmatpush.bf16.msra.mxu1 %v555_v36 }
  0x27   :  { %171 = vmatpush.bf16.msra.mxu0 %v545_v6  ;;  %566 = vmatpush.bf16.msra.mxu3 %v545_v6 }
  0x29   :  { %343 = vmatpush.bf16.msra.mxu1 %v554_v37 }
  0x2b   :  { %172 = vmatpush.bf16.msra.mxu0 %v544_v7  ;;  %567 = vmatpush.bf16.msra.mxu3 %v544_v7 }
  0x2d   :  { %344 = vmatpush.bf16.msra.mxu1 %v553_v38 }
  0x2e   :  { %173 = vmatmul.bf16.vlgmr.msra.gmra.mxu0 %v89_v10  ;;  %198 = vmatmul.bf16.vlgmr.msra.gmra.mxu3 %v94_v19 }
  0x31   :  { %345 = vmatpush.bf16.msra.mxu1 %v552_v39 }
  0x3e   :  { %178 = vmatmul.bf16.gmra.mxu0 %v90_v13  ;;  %203 = vmatmul.bf16.gmra.mxu3 %v95_v29 }
  0x4e   :  { %183 = vmatmul.bf16.gmra.mxu0 %v91_v16  ;;  %208 = vmatmul.bf16.gmra.mxu3 %v96_v35 }
  0x5e   :  { %188 = vmatmul.bf16.gmra.mxu0 %v92_v28 }
  0x6e   :  { %193 = vmatmul.bf16.gmra.mxu0 %v93_v34 }
  0xab   :  { %v174_v40 = vpop.f32.mrf.mxu0 }
  0xac   :  { %v175_v42 = vadd.f32 %v784_v41, %v174_v40 }
  0xae   :  { %v230_v44 = vmul.f32 0.2, %v175_v42  ;;  %vm214_vm0 = vcmp.gt.f32.partialorder %v175_v42, 0.0 }
  0xb0   :  { %v246_v47 = vsel %vm214_vm0, %v175_v42, %v230_v44 }
  0xb1   :  { %v199_v13 = vpop.f32.mrf.mxu3 }
  0xb2   :  { %v200_v25 = vadd.f32 %v784_v41, %v199_v13 }
  0xb3   :  { %v176_v43 = vpop.f32.mrf.mxu0 }
  0xb4   :  { %v177_v45 = vadd.f32 %v784_v41, %v176_v43  ;;  %v240_v27 = vmul.f32 0.2, %v200_v25  ;;  %vm224_vm10 = vcmp.gt.f32.partialorder %v200_v25, 0.0 }
  0xb6   :  { %v231_v46 = vmul.f32 0.2, %v177_v45  ;;  %vm215_vm1 = vcmp.gt.f32.partialorder %v177_v45, 0.0  ;;  %v256_v29 = vsel %vm224_vm10, %v200_v25, %v240_v27 }
  0xb8   :  { %v247_v48 = vsel %vm215_vm1, %v177_v45, %v231_v46 }
  0xb9   :  { %v262_v49 = vpack.c.bf16 %v247_v48, %v246_v47  ;;  %v201_v17 = vpop.f32.mrf.mxu3 }
  0xba   :  { %v202_v26 = vadd.f32 %v784_v41, %v201_v17 }
  0xbb   :  { %v179_v50 = vpop.f32.mrf.mxu0  ;;  %346 = vmatmul.bf16.vlgmr.msra.gmra.mxu1 %v262_v49 }
  0xbc   :  { %v180_v51 = vadd.f32 %v784_v41, %v179_v50  ;;  %v241_v28 = vmul.f32 0.2, %v202_v26  ;;  %vm225_vm11 = vcmp.gt.f32.partialorder %v202_v26, 0.0 }
  0xbe   :  { %v232_v53 = vmul.f32 0.2, %v180_v51  ;;  %vm216_vm2 = vcmp.gt.f32.partialorder %v180_v51, 0.0  ;;  %v257_v30 = vsel %vm225_vm11, %v202_v26, %v241_v28 }
  0xbf   :  { %v267_v32 = vpack.c.bf16 %v257_v30, %v256_v29 }
  0xc0   :  { %v248_v56 = vsel %vm216_vm2, %v180_v51, %v232_v53  ;;  %v805_v51 = vld [vmem:[%s854_s4] ss:$0 sm:$0xff] }
  0xc1   :  { %v204_v24 = vpop.f32.mrf.mxu3 }
  0xc2   :  { %v205_v33 = vadd.f32 %v784_v41, %v204_v24 }
  0xc3   :  { %v181_v52 = vpop.f32.mrf.mxu0 }
  0xc4   :  { %v182_v54 = vadd.f32 %v784_v41, %v181_v52  ;;  %v242_v36 = vmul.f32 0.2, %v205_v33  ;;  %vm226_vm12 = vcmp.gt.f32.partialorder %v205_v33, 0.0 }
  0xc6   :  { %v233_v55 = vmul.f32 0.2, %v182_v54  ;;  %vm217_vm3 = vcmp.gt.f32.partialorder %v182_v54, 0.0  ;;  %v258_v38 = vsel %vm226_vm12, %v205_v33, %v242_v36 }
  0xc8   :  { %v249_v57 = vsel %vm217_vm3, %v182_v54, %v233_v55 }
  0xc9   :  { %v263_v58 = vpack.c.bf16 %v249_v57, %v248_v56  ;;  %v206_v31 = vpop.f32.mrf.mxu3 }
  0xca   :  { %v207_v34 = vadd.f32 %v784_v41, %v206_v31 }
  0xcb   :  { %v184_v59 = vpop.f32.mrf.mxu0  ;;  %351 = vmatmul.bf16.gmra.mxu1 %v263_v58 }
  0xcc   :  { %v185_v60 = vadd.f32 %v784_v41, %v184_v59  ;;  %v243_v37 = vmul.f32 0.2, %v207_v34  ;;  %vm227_vm13 = vcmp.gt.f32.partialorder %v207_v34, 0.0 }
  0xce   :  { %v234_v62 = vmul.f32 0.2, %v185_v60  ;;  %vm218_vm4 = vcmp.gt.f32.partialorder %v185_v60, 0.0  ;;  %v259_v39 = vsel %vm227_vm13, %v207_v34, %v243_v37 }
  0xcf   :  { %v268_v40 = vpack.c.bf16 %v259_v39, %v258_v38 }
  0xd0   :  { %v250_v1 = vsel %vm218_vm4, %v185_v60, %v234_v62 }
  0xd1   :  { %v209_v35 = vpop.f32.mrf.mxu3 }
  0xd2   :  { %v210_v43 = vadd.f32 %v784_v41, %v209_v35 }
  0xd3   :  { %v186_v61 = vpop.f32.mrf.mxu0 }
  0xd4   :  { %v187_v63 = vadd.f32 %v784_v41, %v186_v61  ;;  %v244_v45 = vmul.f32 0.2, %v210_v43  ;;  %vm228_vm14 = vcmp.gt.f32.partialorder %v210_v43, 0.0 }
  0xd6   :  { %v235_v0 = vmul.f32 0.2, %v187_v63  ;;  %vm219_vm5 = vcmp.gt.f32.partialorder %v187_v63, 0.0  ;;  %v260_v47 = vsel %vm228_vm14, %v210_v43, %v244_v45 }
  0xd8   :  { %v251_v2 = vsel %vm219_vm5, %v187_v63, %v235_v0 }
  0xd9   :  { %v264_v3 = vpack.c.bf16 %v251_v2, %v250_v1  ;;  %v211_v42 = vpop.f32.mrf.mxu3 }
  0xda   :  { %v212_v44 = vadd.f32 %v784_v41, %v211_v42 }
  0xdb   :  { %v189_v4 = vpop.f32.mrf.mxu0  ;;  %356 = vmatmul.bf16.gmra.mxu1 %v264_v3 }
  0xdc   :  { %v190_v5 = vadd.f32 %v784_v41, %v189_v4  ;;  %v245_v46 = vmul.f32 0.2, %v212_v44  ;;  %vm229_vm15 = vcmp.gt.f32.partialorder %v212_v44, 0.0 }
  0xde   :  { %v236_v7 = vmul.f32 0.2, %v190_v5  ;;  %vm220_vm6 = vcmp.gt.f32.partialorder %v190_v5, 0.0  ;;  %v261_v48 = vsel %vm229_vm15, %v212_v44, %v245_v46 }
  0xdf   :  { %v269_v49 = vpack.c.bf16 %v261_v48, %v260_v47 }
  0xe0   :  { %v252_v10 = vsel %vm220_vm6, %v190_v5, %v236_v7 }
  0xe3   :  { %v191_v6 = vpop.f32.mrf.mxu0 }
  0xe4   :  { %v192_v8 = vadd.f32 %v784_v41, %v191_v6 }
  0xe6   :  { %v237_v9 = vmul.f32 0.2, %v192_v8  ;;  %vm221_vm7 = vcmp.gt.f32.partialorder %v192_v8, 0.0 }
  0xe8   :  { %v253_v11 = vsel %vm221_vm7, %v192_v8, %v237_v9 }
  0xe9   :  { %v265_v12 = vpack.c.bf16 %v253_v11, %v252_v10 }
  0xeb   :  { %v194_v14 = vpop.f32.mrf.mxu0  ;;  %361 = vmatmul.bf16.gmra.mxu1 %v265_v12 }
  0xec   :  { %v195_v15 = vadd.f32 %v784_v41, %v194_v14 }
  0xee   :  { %v238_v18 = vmul.f32 0.2, %v195_v15  ;;  %vm222_vm8 = vcmp.gt.f32.partialorder %v195_v15, 0.0 }
  0xf0   :  { %v254_v21 = vsel %vm222_vm8, %v195_v15, %v238_v18 }
  0xf3   :  { %v196_v16 = vpop.f32.mrf.mxu0 }
  0xf4   :  { %v197_v19 = vadd.f32 %v784_v41, %v196_v16 }
  0xf6   :  { %v239_v20 = vmul.f32 0.2, %v197_v19  ;;  %vm223_vm9 = vcmp.gt.f32.partialorder %v197_v19, 0.0 }
  0xf8   :  { %v255_v22 = vsel %vm223_vm9, %v197_v19, %v239_v20 }
  0xf9   :  { %v266_v23 = vpack.c.bf16 %v255_v22, %v254_v21 }
  0xfb   :  { %366 = vmatmul.bf16.gmra.mxu1 %v266_v23 }
 0x10b   :  { %371 = vmatmul.bf16.gmra.mxu1 %v267_v32 }
 0x11b   :  { %376 = vmatmul.bf16.gmra.mxu1 %v268_v40 }
 0x12b   :  { %381 = vmatmul.bf16.gmra.mxu1 %v269_v49 }
 0x138   :  { %v347_v50 = vpop.f32.mrf.mxu1 }
 0x139   :  { %v348_v52 = vadd.f32 %v805_v51, %v347_v50 }
 0x13b   :  { %v403_v54 = vmul.f32 0.2, %v348_v52  ;;  %vm387_vm0 = vcmp.gt.f32.partialorder %v348_v52, 0.0 }
 0x13d   :  { %v809_v56 = vsel %vm387_vm0, %v348_v52, %v403_v54 }
 0x140   :  { %v349_v53 = vpop.f32.mrf.mxu1 }
 0x141   :  { %v350_v41 = vadd.f32 %v805_v51, %v349_v53 }
 0x143   :  { %v404_v55 = vmul.f32 0.2, %v350_v41  ;;  %vm388_vm1 = vcmp.gt.f32.partialorder %v350_v41, 0.0 }
 0x145   :  { %v811_v57 = vsel %vm388_vm1, %v350_v41, %v404_v55 }
 0x146   :  { %v437_v58 = vpack.c.bf16 %v811_v57, %v809_v56 }
 0x148   :  { %v352_v59 = vpop.f32.mrf.mxu1 }
 0x149   :  { %v353_v60 = vadd.f32 %v805_v51, %v352_v59 }
 0x14b   :  { %v405_v62 = vmul.f32 0.2, %v353_v60  ;;  %vm389_vm2 = vcmp.gt.f32.partialorder %v353_v60, 0.0 }
 0x14d   :  { %v817_v1 = vsel %vm389_vm2, %v353_v60, %v405_v62 }
 0x150   :  { %v354_v61 = vpop.f32.mrf.mxu1 }
 0x151   :  { %v355_v63 = vadd.f32 %v805_v51, %v354_v61 }
 0x153   :  { %v406_v0 = vmul.f32 0.2, %v355_v63  ;;  %vm390_vm3 = vcmp.gt.f32.partialorder %v355_v63, 0.0 }
 0x155   :  { %v819_v2 = vsel %vm390_vm3, %v355_v63, %v406_v0  ;;  %v459_v63 = vstv %s856_s6 }
 0x156   :  { %v438_v3 = vpack.c.bf16 %v819_v2, %v817_v1 }
 0x158   :  { %v357_v4 = vpop.f32.mrf.mxu1 }
 0x159   :  { %v358_v5 = vadd.f32 %v805_v51, %v357_v4 }
 0x15b   :  { %v407_v7 = vmul.f32 0.2, %v358_v5  ;;  %vm391_vm4 = vcmp.gt.f32.partialorder %v358_v5, 0.0 }
 0x15d   :  { %v825_v10 = vsel %vm391_vm4, %v358_v5, %v407_v7 }
 0x160   :  { %v359_v6 = vpop.f32.mrf.mxu1 }
 0x161   :  { %v360_v8 = vadd.f32 %v805_v51, %v359_v6 }
 0x163   :  { %v408_v9 = vmul.f32 0.2, %v360_v8  ;;  %vm392_vm5 = vcmp.gt.f32.partialorder %v360_v8, 0.0 }
 0x165   :  { %v424_v11 = vsel %vm392_vm5, %v360_v8, %v408_v9 }
 0x166   :  { %v439_v12 = vpack.c.bf16 %v424_v11, %v825_v10 }
 0x168   :  { %v362_v13 = vpop.f32.mrf.mxu1 }
 0x169   :  { %v363_v14 = vadd.f32 %v805_v51, %v362_v13 }
 0x16b   :  { %v409_v16 = vmul.f32 0.2, %v363_v14  ;;  %vm393_vm6 = vcmp.gt.f32.partialorder %v363_v14, 0.0 }
 0x16d   :  { %v425_v19 = vsel %vm393_vm6, %v363_v14, %v409_v16 }
 0x170   :  { %v364_v15 = vpop.f32.mrf.mxu1 }
 0x171   :  { %v365_v17 = vadd.f32 %v805_v51, %v364_v15 }
 0x173   :  { %v410_v18 = vmul.f32 0.2, %v365_v17  ;;  %vm394_vm7 = vcmp.gt.f32.partialorder %v365_v17, 0.0 }
 0x175   :  { %v426_v20 = vsel %vm394_vm7, %v365_v17, %v410_v18 }
 0x176   :  { %v440_v21 = vpack.c.bf16 %v426_v20, %v425_v19 }
 0x178   :  { %v367_v22 = vpop.f32.mrf.mxu1 }
 0x179   :  { %v368_v23 = vadd.f32 %v805_v51, %v367_v22 }
 0x17b   :  { %v411_v25 = vmul.f32 0.2, %v368_v23  ;;  %vm395_vm8 = vcmp.gt.f32.partialorder %v368_v23, 0.0 }
 0x17d   :  { %v427_v28 = vsel %vm395_vm8, %v368_v23, %v411_v25 }
 0x180   :  { %v369_v24 = vpop.f32.mrf.mxu1 }
 0x181   :  { %v370_v26 = vadd.f32 %v805_v51, %v369_v24 }
 0x183   :  { %v412_v27 = vmul.f32 0.2, %v370_v26  ;;  %vm396_vm9 = vcmp.gt.f32.partialorder %v370_v26, 0.0 }
 0x185   :  { %v428_v29 = vsel %vm396_vm9, %v370_v26, %v412_v27 }
 0x186   :  { %v441_v30 = vpack.c.bf16 %v428_v29, %v427_v28 }
 0x188   :  { %v372_v31 = vpop.f32.mrf.mxu1 }
 0x189   :  { %v373_v52 = vadd.f32 %v805_v51, %v372_v31 }
 0x18b   :  { %v413_v55 = vmul.f32 0.2, %v373_v52  ;;  %vm397_vm15 = vcmp.gt.f32.partialorder %v373_v52, 0.0 }
 0x18d   :  { %v429_v60 = vsel %vm397_vm15, %v373_v52, %v413_v55 }
 0x190   :  { %v374_v32 = vpop.f32.mrf.mxu1 }
 0x191   :  { %v375_v49 = vadd.f32 %v805_v51, %v374_v32 }
 0x193   :  { %v414_v41 = vmul.f32 0.2, %v375_v49  ;;  %vm398_vm14 = vcmp.gt.f32.partialorder %v375_v49, 0.0 }
 0x195   :  { %v430_v59 = vsel %vm398_vm14, %v375_v49, %v414_v41 }
 0x196   :  { %v442_v61 = vpack.c.bf16 %v430_v59, %v429_v60 }
 0x198   :  { %v377_v33 = vpop.f32.mrf.mxu1 }
 0x199   :  { %v378_v43 = vadd.f32 %v805_v51, %v377_v33 }
 0x19b   :  { %v415_v48 = vmul.f32 0.2, %v378_v43  ;;  %vm399_vm13 = vcmp.gt.f32.partialorder %v378_v43, 0.0 }
 0x19d   :  { %v431_v53 = vsel %vm399_vm13, %v378_v43, %v415_v48 }
 0x1a0   :  { %v379_v34 = vpop.f32.mrf.mxu1 }
 0x1a1   :  { %v380_v40 = vadd.f32 %v805_v51, %v379_v34 }
 0x1a3   :  { %v416_v47 = vmul.f32 0.2, %v380_v40  ;;  %vm400_vm12 = vcmp.gt.f32.partialorder %v380_v40, 0.0 }
 0x1a5   :  { %v432_v50 = vsel %vm400_vm12, %v380_v40, %v416_v47 }
 0x1a6   :  { %v443_v54 = vpack.c.bf16 %v432_v50, %v431_v53 }
 0x1a8   :  { %v382_v35 = vpop.f32.mrf.mxu1 }
 0x1a9   :  { %v383_v36 = vadd.f32 %v805_v51, %v382_v35 }
 0x1ab   :  { %v417_v38 = vmul.f32 0.2, %v383_v36  ;;  %vm401_vm10 = vcmp.gt.f32.partialorder %v383_v36, 0.0 }
 0x1ad   :  { %v433_v44 = vsel %vm401_vm10, %v383_v36, %v417_v38 }
 0x1b0   :  { %v384_v37 = vpop.f32.mrf.mxu1 }
 0x1b1   :  { %v385_v39 = vadd.f32 %v805_v51, %v384_v37  ;;  %v435_v51 = vld [vmem:[#allocation8] sm:$0xff] }
 0x1b2   :  { %v436_v62 = vpack.c.bf16 %v435_v51, %v435_v51 }
 0x1b3   :  { %v418_v42 = vmul.f32 0.2, %v385_v39  ;;  %vm402_vm11 = vcmp.gt.f32.partialorder %v385_v39, 0.0 }
 0x1b5   :  { %v434_v45 = vsel %vm402_vm11, %v385_v39, %v418_v42 }
 0x1b6   :  { %v444_v46 = vpack.c.bf16 %v434_v45, %v433_v44 }
 0x1b8   :  { %445 = vmatpush.bf16.xpose.msra.mxu2 %v444_v46 }
 0x1c0   :  { %446 = vmatpush.bf16.xpose.msra.mxu2 %v443_v54 }
 0x1c8   :  { %447 = vmatpush.bf16.xpose.msra.mxu2 %v442_v61 }
 0x1d0   :  { %448 = vmatpush.bf16.xpose.msra.mxu2 %v441_v30 }
 0x1d8   :  { %449 = vmatpush.bf16.xpose.msra.mxu2 %v440_v21 }
 0x1e0   :  { %450 = vmatpush.bf16.xpose.msra.mxu2 %v439_v12 }
 0x1e8   :  { %451 = vmatpush.bf16.xpose.msra.mxu2 %v438_v3 }
 0x1f0   :  { %452 = vmatpush.bf16.xpose.msra.mxu2 %v437_v58 }
 0x1f7   :  { %453 = vmatmul.bf16.vlgmr.msra.gmra.mxu2 %v436_v62 }
 0x27a   :  { %v454_v0 = vpop.f32.mrf.mxu2 }
 0x27b   :  { %v460_v1 = vadd.f32 %v459_v63, %v454_v0 }
 0x27d   :  { %461 = vst [vmem:[#allocation9] sm:$0x1] %v460_v1 }
 0x27e   :  { %472 = dma.vmem_to_hbm [thread:$0]  %s468_s25, 16, %s470_s28, [#allocation5]  }
 0x282   :  { %v456_v56 = vpop.f32.mrf.mxu2 }
 0x283   :  { %676 = dma.done.wait [#allocation5], 16  }
 0x284   :  { %677 = vsyncadd [#allocation5], 4294967280 }
 0x285   :  { %477 = vsyncpa [#allocation4], 1 }
 0x286   :  { %478 = vsyncpa [#allocation7], 1 }
 0x287   :  { %479 = vsyncpa [#allocation5], 1 }

// kernel: tpu_custom_call.1
= control target key start
LH: loop header
LB: loop body
LE: loop exit
PB: predicated region body
PF: predicated region fallthrough
CT: control target
= control target key end

     0   :  { %13 = vsyncpa [#allocation4], 0  ;;  %s850_s0 = inlined_call_operand.vmem [shape: f32[2,128], index: 0, kind: input, shape index: {}]   ;;  %s851_s1 = inlined_call_operand.hbm [shape: bf16[128,128], index: 1, kind: input, shape index: {}]   ;;  %s852_s2 = inlined_call_operand.vmem [shape: f32[1,128], index: 2, kind: input, shape index: {}]   ;;  %s853_s3 = inlined_call_operand.hbm [shape: bf16[128,128], index: 3, kind: input, shape index: {}]   ;;  %s854_s4 = inlined_call_operand.vmem [shape: f32[1,128], index: 4, kind: input, shape index: {}]   ;;  %s855_s5 = inlined_call_operand.hbm [shape: f32[8,128], index: 5, kind: input, shape index: {}]   ;;  %s856_s6 = inlined_call_operand.<no memory space> [shape: f32[1,1], index: 6, kind: input, shape index: {}]   ;;  %s857_s7 = inlined_call_operand.hbm [shape: f32[1,128], index: 7, kind: output, shape index: {}]  }
   0x1   :  { %14 = vsyncpa [#allocation7], 0 }
   0x2   :  { %15 = vsyncpa [#allocation5], 0  ;;  %s37_s26 = sshll.u32 %s853_s3, 4  ;;  %s678_s27 = smov [#allocation6]   ;;  %s38_s26 = int_to_ptr.hbm [resolvable:$true] %s37_s26 }
   0x3   :  { %s39_s28 = sshll.u32 %s678_s27, 4  ;;  %s22_s8 = sshll.u32 %s851_s1, 4  ;;  %s40_s28 = int_to_ptr.vmem [resolvable:$true] %s39_s28  ;;  %s23_s8 = int_to_ptr.hbm [resolvable:$true] %s22_s8 }
   0x4   :  { %s679_s9 = smov 64   ;;  %s680_s10 = smov 4  }
   0x5   :  { %45 = dma.hbm_to_vmem [thread:$0]  %s38_s26, 1024, %s40_s28, [#allocation7], %s679_s9, %s679_s9, %s680_s10  }
   0x6   :  { %s681_s11 = smov [#allocation3]   ;;  %s53_s15 = sshll.u32 %s855_s5, 4  ;;  %s54_s15 = int_to_ptr.hbm [resolvable:$true] %s53_s15 }
   0x7   :  { %s24_s12 = sshll.u32 %s681_s11, 4  ;;  %s682_s3 = smov [#allocation8]   ;;  %s25_s12 = int_to_ptr.vmem [resolvable:$true] %s24_s12 }
   0x8   :  { %30 = dma.hbm_to_vmem [thread:$0]  %s23_s8, 1024, %s25_s12, [#allocation4], %s679_s9, %s679_s9, %s680_s10  }
   0x9   :  { %s55_s16 = sshll.u32 %s682_s3, 4  ;;  %s56_s16 = int_to_ptr.vmem [resolvable:$true] %s55_s16 }
   0xa   :  { %58 = dma.hbm_to_vmem [thread:$0]  %s54_s15, 128, %s56_s16, [#allocation7]  }
   0xb   :  { %672 = dma.done.wait [#allocation4], 1024  }
   0xc   :  { %673 = vsyncadd [#allocation4], 4294966272 }
   0xd   :  { %674 = dma.done.wait [#allocation7], 1152  }
   0xe   :  { %675 = vsyncadd [#allocation7], 4294966144  ;;  %v551_v0 = vld [vmem:[#allocation3 + $0x38] sm:$0xff]  ;;  %v550_v1 = vld [vmem:[#allocation3 + $0x30] sm:$0xff]  ;;  %s683_s24 = smov [#allocation9]   ;;  %s469_s28 = sshll.u32 %s857_s7, 4  ;;  %s470_s28 = int_to_ptr.hbm [resolvable:$true] %s469_s28 }
   0xf   :  { %165 = vmatpush.bf16.msra.mxu0 %v551_v0  ;;  %560 = vmatpush.bf16.msra.mxu3 %v551_v0  ;;  %v549_v2 = vld [vmem:[#allocation3 + $0x28] sm:$0xff]  ;;  %v548_v3 = vld [vmem:[#allocation3 + $0x20] sm:$0xff]  ;;  %v547_v4 = vld [vmem:[#allocation3 + $0x18] sm:$0xff]  ;;  %s467_s25 = sshll.u32 %s683_s24, 4  ;;  %s468_s25 = int_to_ptr.vmem [resolvable:$true] %s467_s25 }
  0x10   :  { %v546_v5 = vld [vmem:[#allocation3 + $0x10] sm:$0xff]  ;;  %v545_v6 = vld [vmem:[#allocation3 + $0x8] sm:$0xff]  ;;  %v544_v7 = vld [vmem:[#allocation3] sm:$0xff] }
  0x11   :  { %v73_v8 = vld [vmem:[%s850_s0] sm:$0xff]  ;;  %v74_v9 = vld [vmem:[%s850_s0 + $0x8] sm:$0xff]  ;;  %v75_v11 = vld [vmem:[%s850_s0 + $0x10] sm:$0xff] }
  0x12   :  { %v89_v10 = vpack.c.bf16 %v74_v9, %v73_v8  ;;  %v76_v12 = vld [vmem:[%s850_s0 + $0x18] sm:$0xff]  ;;  %v77_v14 = vld [vmem:[%s850_s0 + $0x20] sm:$0xff]  ;;  %v78_v15 = vld [vmem:[%s850_s0 + $0x28] sm:$0xff] }
  0x13   :  { %166 = vmatpush.bf16.msra.mxu0 %v550_v1  ;;  %561 = vmatpush.bf16.msra.mxu3 %v550_v1  ;;  %v90_v13 = vpack.c.bf16 %v76_v12, %v75_v11  ;;  %v91_v16 = vpack.c.bf16 %v78_v15, %v77_v14  ;;  %v83_v17 = vld [vmem:[%s850_s0 + $0x50] sm:$0xff]  ;;  %v84_v18 = vld [vmem:[%s850_s0 + $0x58] sm:$0xff]  ;;  %v557_v22 = vld [vmem:[#allocation6 + $0x28] sm:$0xff] }
  0x14   :  { %v94_v19 = vpack.c.bf16 %v84_v18, %v83_v17  ;;  %v559_v20 = vld [vmem:[#allocation6 + $0x38] sm:$0xff]  ;;  %v558_v21 = vld [vmem:[#allocation6 + $0x30] sm:$0xff]  ;;  %v85_v25 = vld [vmem:[%s850_s0 + $0x60] sm:$0xff] }
  0x15   :  { %338 = vmatpush.bf16.msra.mxu1 %v559_v20  ;;  %v79_v23 = vld [vmem:[%s850_s0 + $0x30] sm:$0xff]  ;;  %v80_v24 = vld [vmem:[%s850_s0 + $0x38] sm:$0xff]  ;;  %v86_v26 = vld [vmem:[%s850_s0 + $0x68] sm:$0xff] }
  0x16   :  { %v556_v27 = vld [vmem:[#allocation6 + $0x20] sm:$0xff]  ;;  %v92_v28 = vpack.c.bf16 %v80_v24, %v79_v23  ;;  %v95_v29 = vpack.c.bf16 %v86_v26, %v85_v25  ;;  %v82_v31 = vld [vmem:[%s850_s0 + $0x48] sm:$0xff]  ;;  %v87_v32 = vld [vmem:[%s850_s0 + $0x70] sm:$0xff] }
  0x17   :  { %167 = vmatpush.bf16.msra.mxu0 %v549_v2  ;;  %562 = vmatpush.bf16.msra.mxu3 %v549_v2  ;;  %v81_v30 = vld [vmem:[%s850_s0 + $0x40] sm:$0xff]  ;;  %v88_v33 = vld [vmem:[%s850_s0 + $0x78] sm:$0xff]  ;;  %v554_v37 = vld [vmem:[#allocation6 + $0x10] sm:$0xff] }
  0x18   :  { %v93_v34 = vpack.c.bf16 %v82_v31, %v81_v30  ;;  %v96_v35 = vpack.c.bf16 %v88_v33, %v87_v32  ;;  %v555_v36 = vld [vmem:[#allocation6 + $0x18] sm:$0xff]  ;;  %v553_v38 = vld [vmem:[#allocation6 + $0x8] sm:$0xff]  ;;  %v552_v39 = vld [vmem:[#allocation6] sm:$0xff] }
  0x19   :  { %339 = vmatpush.bf16.msra.mxu1 %v558_v21  ;;  %v784_v41 = vld [vmem:[%s852_s2] ss:$0 sm:$0xff] }
  0x1b   :  { %168 = vmatpush.bf16.msra.mxu0 %v548_v3  ;;  %563 = vmatpush.bf16.msra.mxu3 %v548_v3 }
  0x1d   :  { %340 = vmatpush.bf16.msra.mxu1 %v557_v22 }
  0x1f   :  { %169 = vmatpush.bf16.msra.mxu0 %v547_v4  ;;  %564 = vmatpush.bf16.msra.mxu3 %v547_v4 }
  0x21   :  { %341 = vmatpush.bf16.msra.mxu1 %v556_v27 }
  0x23   :  { %170 = vmatpush.bf16.msra.mxu0 %v546_v5  ;;  %565 = vmatpush.bf16.msra.mxu3 %v546_v5 }
  0x25   :  { %342 = vmatpush.bf16.msra.mxu1 %v555_v36 }
  0x27   :  { %171 = vmatpush.bf16.msra.mxu0 %v545_v6  ;;  %566 = vmatpush.bf16.msra.mxu3 %v545_v6 }
  0x29   :  { %343 = vmatpush.bf16.msra.mxu1 %v554_v37 }
  0x2b   :  { %172 = vmatpush.bf16.msra.mxu0 %v544_v7  ;;  %567 = vmatpush.bf16.msra.mxu3 %v544_v7 }
  0x2d   :  { %344 = vmatpush.bf16.msra.mxu1 %v553_v38 }
  0x2e   :  { %173 = vmatmul.bf16.vlgmr.msra.gmra.mxu0 %v89_v10  ;;  %198 = vmatmul.bf16.vlgmr.msra.gmra.mxu3 %v94_v19 }
  0x31   :  { %345 = vmatpush.bf16.msra.mxu1 %v552_v39 }
  0x3e   :  { %178 = vmatmul.bf16.gmra.mxu0 %v90_v13  ;;  %203 = vmatmul.bf16.gmra.mxu3 %v95_v29 }
  0x4e   :  { %183 = vmatmul.bf16.gmra.mxu0 %v91_v16  ;;  %208 = vmatmul.bf16.gmra.mxu3 %v96_v35 }
  0x5e   :  { %188 = vmatmul.bf16.gmra.mxu0 %v92_v28 }
  0x6e   :  { %193 = vmatmul.bf16.gmra.mxu0 %v93_v34 }
  0xab   :  { %v174_v40 = vpop.f32.mrf.mxu0 }
  0xac   :  { %v175_v42 = vadd.f32 %v784_v41, %v174_v40 }
  0xae   :  { %v230_v44 = vmul.f32 0.2, %v175_v42  ;;  %vm214_vm0 = vcmp.gt.f32.partialorder %v175_v42, 0.0 }
  0xb0   :  { %v246_v47 = vsel %vm214_vm0, %v175_v42, %v230_v44 }
  0xb1   :  { %v199_v13 = vpop.f32.mrf.mxu3 }
  0xb2   :  { %v200_v25 = vadd.f32 %v784_v41, %v199_v13 }
  0xb3   :  { %v176_v43 = vpop.f32.mrf.mxu0 }
  0xb4   :  { %v177_v45 = vadd.f32 %v784_v41, %v176_v43  ;;  %v240_v27 = vmul.f32 0.2, %v200_v25  ;;  %vm224_vm10 = vcmp.gt.f32.partialorder %v200_v25, 0.0 }
  0xb6   :  { %v231_v46 = vmul.f32 0.2, %v177_v45  ;;  %vm215_vm1 = vcmp.gt.f32.partialorder %v177_v45, 0.0  ;;  %v256_v29 = vsel %vm224_vm10, %v200_v25, %v240_v27 }
  0xb8   :  { %v247_v48 = vsel %vm215_vm1, %v177_v45, %v231_v46 }
  0xb9   :  { %v262_v49 = vpack.c.bf16 %v247_v48, %v246_v47  ;;  %v201_v17 = vpop.f32.mrf.mxu3 }
  0xba   :  { %v202_v26 = vadd.f32 %v784_v41, %v201_v17 }
  0xbb   :  { %v179_v50 = vpop.f32.mrf.mxu0  ;;  %346 = vmatmul.bf16.vlgmr.msra.gmra.mxu1 %v262_v49 }
  0xbc   :  { %v180_v51 = vadd.f32 %v784_v41, %v179_v50  ;;  %v241_v28 = vmul.f32 0.2, %v202_v26  ;;  %vm225_vm11 = vcmp.gt.f32.partialorder %v202_v26, 0.0 }
  0xbe   :  { %v232_v53 = vmul.f32 0.2, %v180_v51  ;;  %vm216_vm2 = vcmp.gt.f32.partialorder %v180_v51, 0.0  ;;  %v257_v30 = vsel %vm225_vm11, %v202_v26, %v241_v28 }
  0xbf   :  { %v267_v32 = vpack.c.bf16 %v257_v30, %v256_v29 }
  0xc0   :  { %v248_v56 = vsel %vm216_vm2, %v180_v51, %v232_v53  ;;  %v805_v51 = vld [vmem:[%s854_s4] ss:$0 sm:$0xff] }
  0xc1   :  { %v204_v24 = vpop.f32.mrf.mxu3 }
  0xc2   :  { %v205_v33 = vadd.f32 %v784_v41, %v204_v24 }
  0xc3   :  { %v181_v52 = vpop.f32.mrf.mxu0 }
  0xc4   :  { %v182_v54 = vadd.f32 %v784_v41, %v181_v52  ;;  %v242_v36 = vmul.f32 0.2, %v205_v33  ;;  %vm226_vm12 = vcmp.gt.f32.partialorder %v205_v33, 0.0 }
  0xc6   :  { %v233_v55 = vmul.f32 0.2, %v182_v54  ;;  %vm217_vm3 = vcmp.gt.f32.partialorder %v182_v54, 0.0  ;;  %v258_v38 = vsel %vm226_vm12, %v205_v33, %v242_v36 }
  0xc8   :  { %v249_v57 = vsel %vm217_vm3, %v182_v54, %v233_v55 }
  0xc9   :  { %v263_v58 = vpack.c.bf16 %v249_v57, %v248_v56  ;;  %v206_v31 = vpop.f32.mrf.mxu3 }
  0xca   :  { %v207_v34 = vadd.f32 %v784_v41, %v206_v31 }
  0xcb   :  { %v184_v59 = vpop.f32.mrf.mxu0  ;;  %351 = vmatmul.bf16.gmra.mxu1 %v263_v58 }
  0xcc   :  { %v185_v60 = vadd.f32 %v784_v41, %v184_v59  ;;  %v243_v37 = vmul.f32 0.2, %v207_v34  ;;  %vm227_vm13 = vcmp.gt.f32.partialorder %v207_v34, 0.0 }
  0xce   :  { %v234_v62 = vmul.f32 0.2, %v185_v60  ;;  %vm218_vm4 = vcmp.gt.f32.partialorder %v185_v60, 0.0  ;;  %v259_v39 = vsel %vm227_vm13, %v207_v34, %v243_v37 }
  0xcf   :  { %v268_v40 = vpack.c.bf16 %v259_v39, %v258_v38 }
  0xd0   :  { %v250_v1 = vsel %vm218_vm4, %v185_v60, %v234_v62 }
  0xd1   :  { %v209_v35 = vpop.f32.mrf.mxu3 }
  0xd2   :  { %v210_v43 = vadd.f32 %v784_v41, %v209_v35 }
  0xd3   :  { %v186_v61 = vpop.f32.mrf.mxu0 }
  0xd4   :  { %v187_v63 = vadd.f32 %v784_v41, %v186_v61  ;;  %v244_v45 = vmul.f32 0.2, %v210_v43  ;;  %vm228_vm14 = vcmp.gt.f32.partialorder %v210_v43, 0.0 }
  0xd6   :  { %v235_v0 = vmul.f32 0.2, %v187_v63  ;;  %vm219_vm5 = vcmp.gt.f32.partialorder %v187_v63, 0.0  ;;  %v260_v47 = vsel %vm228_vm14, %v210_v43, %v244_v45 }
  0xd8   :  { %v251_v2 = vsel %vm219_vm5, %v187_v63, %v235_v0 }
  0xd9   :  { %v264_v3 = vpack.c.bf16 %v251_v2, %v250_v1  ;;  %v211_v42 = vpop.f32.mrf.mxu3 }
  0xda   :  { %v212_v44 = vadd.f32 %v784_v41, %v211_v42 }
  0xdb   :  { %v189_v4 = vpop.f32.mrf.mxu0  ;;  %356 = vmatmul.bf16.gmra.mxu1 %v264_v3 }
  0xdc   :  { %v190_v5 = vadd.f32 %v784_v41, %v189_v4  ;;  %v245_v46 = vmul.f32 0.2, %v212_v44  ;;  %vm229_vm15 = vcmp.gt.f32.partialorder %v212_v44, 0.0 }
  0xde   :  { %v236_v7 = vmul.f32 0.2, %v190_v5  ;;  %vm220_vm6 = vcmp.gt.f32.partialorder %v190_v5, 0.0  ;;  %v261_v48 = vsel %vm229_vm15, %v212_v44, %v245_v46 }
  0xdf   :  { %v269_v49 = vpack.c.bf16 %v261_v48, %v260_v47 }
  0xe0   :  { %v252_v10 = vsel %vm220_vm6, %v190_v5, %v236_v7 }
  0xe3   :  { %v191_v6 = vpop.f32.mrf.mxu0 }
  0xe4   :  { %v192_v8 = vadd.f32 %v784_v41, %v191_v6 }
  0xe6   :  { %v237_v9 = vmul.f32 0.2, %v192_v8  ;;  %vm221_vm7 = vcmp.gt.f32.partialorder %v192_v8, 0.0 }
  0xe8   :  { %v253_v11 = vsel %vm221_vm7, %v192_v8, %v237_v9 }
  0xe9   :  { %v265_v12 = vpack.c.bf16 %v253_v11, %v252_v10 }
  0xeb   :  { %v194_v14 = vpop.f32.mrf.mxu0  ;;  %361 = vmatmul.bf16.gmra.mxu1 %v265_v12 }
  0xec   :  { %v195_v15 = vadd.f32 %v784_v41, %v194_v14 }
  0xee   :  { %v238_v18 = vmul.f32 0.2, %v195_v15  ;;  %vm222_vm8 = vcmp.gt.f32.partialorder %v195_v15, 0.0 }
  0xf0   :  { %v254_v21 = vsel %vm222_vm8, %v195_v15, %v238_v18 }
  0xf3   :  { %v196_v16 = vpop.f32.mrf.mxu0 }
  0xf4   :  { %v197_v19 = vadd.f32 %v784_v41, %v196_v16 }
  0xf6   :  { %v239_v20 = vmul.f32 0.2, %v197_v19  ;;  %vm223_vm9 = vcmp.gt.f32.partialorder %v197_v19, 0.0 }
  0xf8   :  { %v255_v22 = vsel %vm223_vm9, %v197_v19, %v239_v20 }
  0xf9   :  { %v266_v23 = vpack.c.bf16 %v255_v22, %v254_v21 }
  0xfb   :  { %366 = vmatmul.bf16.gmra.mxu1 %v266_v23 }
 0x10b   :  { %371 = vmatmul.bf16.gmra.mxu1 %v267_v32 }
 0x11b   :  { %376 = vmatmul.bf16.gmra.mxu1 %v268_v40 }
 0x12b   :  { %381 = vmatmul.bf16.gmra.mxu1 %v269_v49 }
 0x138   :  { %v347_v50 = vpop.f32.mrf.mxu1 }
 0x139   :  { %v348_v52 = vadd.f32 %v805_v51, %v347_v50 }
 0x13b   :  { %v403_v54 = vmul.f32 0.2, %v348_v52  ;;  %vm387_vm0 = vcmp.gt.f32.partialorder %v348_v52, 0.0 }
 0x13d   :  { %v809_v56 = vsel %vm387_vm0, %v348_v52, %v403_v54 }
 0x140   :  { %v349_v53 = vpop.f32.mrf.mxu1 }
 0x141   :  { %v350_v41 = vadd.f32 %v805_v51, %v349_v53 }
 0x143   :  { %v404_v55 = vmul.f32 0.2, %v350_v41  ;;  %vm388_vm1 = vcmp.gt.f32.partialorder %v350_v41, 0.0 }
 0x145   :  { %v811_v57 = vsel %vm388_vm1, %v350_v41, %v404_v55 }
 0x146   :  { %v437_v58 = vpack.c.bf16 %v811_v57, %v809_v56 }
 0x148   :  { %v352_v59 = vpop.f32.mrf.mxu1 }
 0x149   :  { %v353_v60 = vadd.f32 %v805_v51, %v352_v59 }
 0x14b   :  { %v405_v62 = vmul.f32 0.2, %v353_v60  ;;  %vm389_vm2 = vcmp.gt.f32.partialorder %v353_v60, 0.0 }
 0x14d   :  { %v817_v1 = vsel %vm389_vm2, %v353_v60, %v405_v62 }
 0x150   :  { %v354_v61 = vpop.f32.mrf.mxu1 }
 0x151   :  { %v355_v63 = vadd.f32 %v805_v51, %v354_v61 }
 0x153   :  { %v406_v0 = vmul.f32 0.2, %v355_v63  ;;  %vm390_vm3 = vcmp.gt.f32.partialorder %v355_v63, 0.0 }
 0x155   :  { %v819_v2 = vsel %vm390_vm3, %v355_v63, %v406_v0  ;;  %v459_v63 = vstv %s856_s6 }
 0x156   :  { %v438_v3 = vpack.c.bf16 %v819_v2, %v817_v1 }
 0x158   :  { %v357_v4 = vpop.f32.mrf.mxu1 }
 0x159   :  { %v358_v5 = vadd.f32 %v805_v51, %v357_v4 }
 0x15b   :  { %v407_v7 = vmul.f32 0.2, %v358_v5  ;;  %vm391_vm4 = vcmp.gt.f32.partialorder %v358_v5, 0.0 }
 0x15d   :  { %v825_v10 = vsel %vm391_vm4, %v358_v5, %v407_v7 }
 0x160   :  { %v359_v6 = vpop.f32.mrf.mxu1 }
 0x161   :  { %v360_v8 = vadd.f32 %v805_v51, %v359_v6 }
 0x163   :  { %v408_v9 = vmul.f32 0.2, %v360_v8  ;;  %vm392_vm5 = vcmp.gt.f32.partialorder %v360_v8, 0.0 }
 0x165   :  { %v424_v11 = vsel %vm392_vm5, %v360_v8, %v408_v9 }
 0x166   :  { %v439_v12 = vpack.c.bf16 %v424_v11, %v825_v10 }
 0x168   :  { %v362_v13 = vpop.f32.mrf.mxu1 }
 0x169   :  { %v363_v14 = vadd.f32 %v805_v51, %v362_v13 }
 0x16b   :  { %v409_v16 = vmul.f32 0.2, %v363_v14  ;;  %vm393_vm6 = vcmp.gt.f32.partialorder %v363_v14, 0.0 }
 0x16d   :  { %v425_v19 = vsel %vm393_vm6, %v363_v14, %v409_v16 }
 0x170   :  { %v364_v15 = vpop.f32.mrf.mxu1 }
 0x171   :  { %v365_v17 = vadd.f32 %v805_v51, %v364_v15 }
 0x173   :  { %v410_v18 = vmul.f32 0.2, %v365_v17  ;;  %vm394_vm7 = vcmp.gt.f32.partialorder %v365_v17, 0.0 }
 0x175   :  { %v426_v20 = vsel %vm394_vm7, %v365_v17, %v410_v18 }
 0x176   :  { %v440_v21 = vpack.c.bf16 %v426_v20, %v425_v19 }
 0x178   :  { %v367_v22 = vpop.f32.mrf.mxu1 }
 0x179   :  { %v368_v23 = vadd.f32 %v805_v51, %v367_v22 }
 0x17b   :  { %v411_v25 = vmul.f32 0.2, %v368_v23  ;;  %vm395_vm8 = vcmp.gt.f32.partialorder %v368_v23, 0.0 }
 0x17d   :  { %v427_v28 = vsel %vm395_vm8, %v368_v23, %v411_v25 }
 0x180   :  { %v369_v24 = vpop.f32.mrf.mxu1 }
 0x181   :  { %v370_v26 = vadd.f32 %v805_v51, %v369_v24 }
 0x183   :  { %v412_v27 = vmul.f32 0.2, %v370_v26  ;;  %vm396_vm9 = vcmp.gt.f32.partialorder %v370_v26, 0.0 }
 0x185   :  { %v428_v29 = vsel %vm396_vm9, %v370_v26, %v412_v27 }
 0x186   :  { %v441_v30 = vpack.c.bf16 %v428_v29, %v427_v28 }
 0x188   :  { %v372_v31 = vpop.f32.mrf.mxu1 }
 0x189   :  { %v373_v52 = vadd.f32 %v805_v51, %v372_v31 }
 0x18b   :  { %v413_v55 = vmul.f32 0.2, %v373_v52  ;;  %vm397_vm15 = vcmp.gt.f32.partialorder %v373_v52, 0.0 }
 0x18d   :  { %v429_v60 = vsel %vm397_vm15, %v373_v52, %v413_v55 }
 0x190   :  { %v374_v32 = vpop.f32.mrf.mxu1 }
 0x191   :  { %v375_v49 = vadd.f32 %v805_v51, %v374_v32 }
 0x193   :  { %v414_v41 = vmul.f32 0.2, %v375_v49  ;;  %vm398_vm14 = vcmp.gt.f32.partialorder %v375_v49, 0.0 }
 0x195   :  { %v430_v59 = vsel %vm398_vm14, %v375_v49, %v414_v41 }
 0x196   :  { %v442_v61 = vpack.c.bf16 %v430_v59, %v429_v60 }
 0x198   :  { %v377_v33 = vpop.f32.mrf.mxu1 }
 0x199   :  { %v378_v43 = vadd.f32 %v805_v51, %v377_v33 }
 0x19b   :  { %v415_v48 = vmul.f32 0.2, %v378_v43  ;;  %vm399_vm13 = vcmp.gt.f32.partialorder %v378_v43, 0.0 }
 0x19d   :  { %v431_v53 = vsel %vm399_vm13, %v378_v43, %v415_v48 }
 0x1a0   :  { %v379_v34 = vpop.f32.mrf.mxu1 }
 0x1a1   :  { %v380_v40 = vadd.f32 %v805_v51, %v379_v34 }
 0x1a3   :  { %v416_v47 = vmul.f32 0.2, %v380_v40  ;;  %vm400_vm12 = vcmp.gt.f32.partialorder %v380_v40, 0.0 }
 0x1a5   :  { %v432_v50 = vsel %vm400_vm12, %v380_v40, %v416_v47 }
 0x1a6   :  { %v443_v54 = vpack.c.bf16 %v432_v50, %v431_v53 }
 0x1a8   :  { %v382_v35 = vpop.f32.mrf.mxu1 }
 0x1a9   :  { %v383_v36 = vadd.f32 %v805_v51, %v382_v35 }
 0x1ab   :  { %v417_v38 = vmul.f32 0.2, %v383_v36  ;;  %vm401_vm10 = vcmp.gt.f32.partialorder %v383_v36, 0.0 }
 0x1ad   :  { %v433_v44 = vsel %vm401_vm10, %v383_v36, %v417_v38 }
 0x1b0   :  { %v384_v37 = vpop.f32.mrf.mxu1 }
 0x1b1   :  { %v385_v39 = vadd.f32 %v805_v51, %v384_v37  ;;  %v435_v51 = vld [vmem:[#allocation8] sm:$0xff] }
 0x1b2   :  { %v436_v62 = vpack.c.bf16 %v435_v51, %v435_v51 }
 0x1b3   :  { %v418_v42 = vmul.f32 0.2, %v385_v39  ;;  %vm402_vm11 = vcmp.gt.f32.partialorder %v385_v39, 0.0 }
 0x1b5   :  { %v434_v45 = vsel %vm402_vm11, %v385_v39, %v418_v42 }
 0x1b6   :  { %v444_v46 = vpack.c.bf16 %v434_v45, %v433_v44 }
 0x1b8   :  { %445 = vmatpush.bf16.xpose.msra.mxu2 %v444_v46 }
 0x1c0   :  { %446 = vmatpush.bf16.xpose.msra.mxu2 %v443_v54 }
 0x1c8   :  { %447 = vmatpush.bf16.xpose.msra.mxu2 %v442_v61 }
 0x1d0   :  { %448 = vmatpush.bf16.xpose.msra.mxu2 %v441_v30 }
 0x1d8   :  { %449 = vmatpush.bf16.xpose.msra.mxu2 %v440_v21 }
 0x1e0   :  { %450 = vmatpush.bf16.xpose.msra.mxu2 %v439_v12 }
 0x1e8   :  { %451 = vmatpush.bf16.xpose.msra.mxu2 %v438_v3 }
 0x1f0   :  { %452 = vmatpush.bf16.xpose.msra.mxu2 %v437_v58 }
 0x1f7   :  { %453 = vmatmul.bf16.vlgmr.msra.gmra.mxu2 %v436_v62 }
 0x27a   :  { %v454_v0 = vpop.f32.mrf.mxu2 }
 0x27b   :  { %v460_v1 = vadd.f32 %v459_v63, %v454_v0 }
 0x27d   :  { %461 = vst [vmem:[#allocation9] sm:$0x1] %v460_v1 }
 0x27e   :  { %472 = dma.vmem_to_hbm [thread:$0]  %s468_s25, 16, %s470_s28, [#allocation5]  }
 0x282   :  { %v456_v56 = vpop.f32.mrf.mxu2 }
 0x283   :  { %676 = dma.done.wait [#allocation5], 16  }
 0x284   :  { %677 = vsyncadd [#allocation5], 4294967280 }
 0x285   :  { %477 = vsyncpa [#allocation4], 1 }
 0x286   :  { %478 = vsyncpa [#allocation7], 1 }
 0x287   :  { %479 = vsyncpa [#allocation5], 1 }

</bundles_post_ra>
